<compile_context>
chip_gen: v7x
topology: tpu7x:2x2x1
jax: 0.10.0
libtpu: 0.0.40
codegen_flags: <defaults>
</compile_context>

<pallas_src>
import functools
import math

import jax
import jax.numpy as jnp
from jax import lax
from jax.experimental import pallas as pl
from jax.experimental.pallas import tpu as pltpu


def _sdpa_kernel(q_ref, k_ref, v_ref, mask_ref, atten_ref, ctx_ref, *, scale, lk_real):
    # Blocks: q (1,1,TQ,Dk); k/v (1,1,Lk_pad,Dk); mask (1,TQ,Lk_pad) int8;
    #         atten (1,1,TQ,Lk_pad); ctx (1,1,TQ,Dk).
    q = q_ref[0, 0] * scale            # (TQ, Dk), input dtype (scale folded into q)
    k = k_ref[0, 0]                    # (Lk_pad, Dk)
    v = v_ref[0, 0]                    # (Lk_pad, Dk)
    m = mask_ref[0]                    # (TQ, Lk_pad) int8, nonzero => masked

    # scores = (q / sqrt(d_k)) @ k^T  — MXU matmul in input dtype, f32 accumulate.
    scores = lax.dot_general(
        q, k,
        dimension_numbers=(((1,), (1,)), ((), ())),
        preferred_element_type=jnp.float32,
    )                                   # (TQ, Lk_pad) f32

    # masked_fill_(mask, -1e9)
    scores = jnp.where(m != 0, jnp.float32(-1e9), scores)

    # Padded key columns (lane-dense padding of Lk) get -inf so they carry
    # exactly zero probability and never perturb the row max.
    lk_pad = scores.shape[-1]
    if lk_pad != lk_real:               # static
        key_idx = lax.broadcasted_iota(jnp.int32, scores.shape, 1)
        scores = jnp.where(key_idx >= lk_real, jnp.float32(-jnp.inf), scores)

    # Numerically stable softmax along keys (f32).
    scores = scores - jnp.max(scores, axis=-1, keepdims=True)
    e = jnp.exp(scores)
    probs = e * pl.reciprocal(jnp.sum(e, axis=-1, keepdims=True), approx=False)

    atten_ref[0, 0] = probs.astype(atten_ref.dtype)

    # context = probs @ v  — probs cast to v.dtype to keep the fast MXU path.
    ctx = jnp.dot(probs.astype(v.dtype), v, preferred_element_type=jnp.float32)
    ctx_ref[0, 0] = ctx.astype(ctx_ref.dtype)


def _pick_q_tile(lq):
    # TQ ~256 keeps double-buffered atten blocks well inside v7x's 64 MiB VMEM
    # while staying at the >=512-element DMA / MXU sweet spot; fall back to the
    # full Lq (the "equals full dim" escape hatch) when it doesn't divide.
    for cand in (256, 128):
        if lq % cand == 0:
            return cand
    return lq


def scaled_dot_product_attention(q, k, v, mask):
    """q,k,v: [B,H,L,Dk]; mask: [B,Lq,Lk] bool. Returns (atten, context)."""
    B, H, Lq, Dk = q.shape
    Lk = k.shape[2]
    scale = 1.0 / math.sqrt(Dk)
    out_dtype = q.dtype

    # Lane-dense atten writeback: pad Lk to the next multiple of 128 if needed.
    Lk_pad = Lk if Lk % 128 == 0 else ((Lk + 127) // 128) * 128
    if Lk_pad != Lk:
        pad = Lk_pad - Lk
        k = jnp.pad(k, ((0, 0), (0, 0), (0, pad), (0, 0)))
        v = jnp.pad(v, ((0, 0), (0, 0), (0, pad), (0, 0)))
        mask = jnp.pad(mask, ((0, 0), (0, 0), (0, pad)))  # pad keys handled in-kernel

    # int8 mask (1 byte, same as bool) — kept as an explicit cast for Mosaic
    # lowering robustness; it fuses with the pad above in XLA.
    mask_i8 = mask.astype(jnp.int8)

    TQ = _pick_q_tile(Lq)
    NQ = Lq // TQ

    # vmem limit from the actual double-buffered block sizes (+ f32 scratch margin).
    itemsize = jnp.dtype(out_dtype).itemsize
    blk_in = TQ * Dk * itemsize + 2 * Lk_pad * Dk * itemsize + TQ * Lk_pad
    blk_out = TQ * Lk_pad * itemsize + TQ * Dk * itemsize
    scratch = 4 * TQ * Lk_pad * 4
    vmem_limit = int(min(96 << 20, max(32 << 20, 2 * (blk_in + blk_out) + scratch + (4 << 20))))

    kernel = functools.partial(_sdpa_kernel, scale=scale, lk_real=Lk)

    atten_p, context = pl.pallas_call(
        kernel,
        out_shape=(
            jax.ShapeDtypeStruct((B, H, Lq, Lk_pad), out_dtype),  # atten (padded)
            jax.ShapeDtypeStruct((B, H, Lq, Dk), out_dtype),      # context (native)
        ),
        grid_spec=pltpu.PrefetchScalarGridSpec(
            num_scalar_prefetch=0,
            grid=(B, H, NQ),  # q-tile axis innermost: K/V stay resident across it
            in_specs=[
                pl.BlockSpec((1, 1, TQ, Dk),     lambda b, h, qi: (b, h, qi, 0)),  # q
                pl.BlockSpec((1, 1, Lk_pad, Dk), lambda b, h, qi: (b, h, 0, 0)),   # k
                pl.BlockSpec((1, 1, Lk_pad, Dk), lambda b, h, qi: (b, h, 0, 0)),   # v
                pl.BlockSpec((1, TQ, Lk_pad),    lambda b, h, qi: (b, qi, 0)),     # mask (shared over h)
            ],
            out_specs=[
                pl.BlockSpec((1, 1, TQ, Lk_pad), lambda b, h, qi: (b, h, qi, 0)),  # atten
                pl.BlockSpec((1, 1, TQ, Dk),     lambda b, h, qi: (b, h, qi, 0)),  # context
            ],
        ),
        compiler_params=pltpu.CompilerParams(
            dimension_semantics=("parallel", "parallel", "arbitrary"),
            vmem_limit_bytes=vmem_limit,
        ),
    )(q, k, v, mask_i8)

    atten = atten_p[..., :Lk] if Lk_pad != Lk else atten_p
    return atten, context


def _reference(q, k, v, mask):
    d_k = q.shape[-1]
    qf = q.astype(jnp.float32)
    kf = k.astype(jnp.float32)
    vf = v.astype(jnp.float32)
    scores = jnp.einsum("bhqd,bhkd->bhqk", qf, kf) / jnp.sqrt(jnp.float32(d_k))
    scores = jnp.where(mask[:, None, :, :], jnp.float32(-1e9), scores)
    atten = jax.nn.softmax(scores, axis=-1)
    context = jnp.einsum("bhqk,bhkd->bhqd", atten, vf)
    return atten, context


if __name__ == "__main__":
    B, H, Lq, Lk, Dk = 2, 2, 8, 8, 32

    key = jax.random.PRNGKey(0)
    kq, kk, kv, km = jax.random.split(key, 4)
    q = jax.random.normal(kq, (B, H, Lq, Dk), dtype=jnp.float32)
    k = jax.random.normal(kk, (B, H, Lk, Dk), dtype=jnp.float32)
    v = jax.random.normal(kv, (B, H, Lk, Dk), dtype=jnp.float32)
    # Boolean mask [B, Lq, Lk]; True entries get -1e9 (e.g. padding mask).
    mask = jax.random.bernoulli(km, p=0.25, shape=(B, Lq, Lk))

    # f32 path — must match the reference tightly.
    atten, context = scaled_dot_product_attention(q, k, v, mask)
    jax.block_until_ready((atten, context))
    atten_ref, context_ref = _reference(q, k, v, mask)
    assert atten.shape == (B, H, Lq, Lk) and context.shape == (B, H, Lq, Dk)
    assert jnp.allclose(atten, atten_ref, atol=1e-5, rtol=1e-5), "atten mismatch (f32)"
    assert jnp.allclose(context, context_ref, atol=1e-5, rtol=1e-5), "context mismatch (f32)"

    # bf16 path — loose sanity check of the low-precision MXU fast path.
    q16, k16, v16 = (x.astype(jnp.bfloat16) for x in (q, k, v))
    atten16, context16 = scaled_dot_product_attention(q16, k16, v16, mask)
    jax.block_until_ready((atten16, context16))
    atten_ref16, context_ref16 = _reference(q16, k16, v16, mask)
    assert jnp.allclose(atten16.astype(jnp.float32), atten_ref16, atol=1e-1, rtol=1e-1), \
        "atten mismatch (bf16)"
    assert jnp.allclose(context16.astype(jnp.float32), context_ref16, atol=1e-1, rtol=1e-1), \
        "context mismatch (bf16)"

    print("KERNEL_OK")
</pallas_src>

<mosaic_0001>
module attributes {stable_mosaic.version = 11 : i64} {
  func.func @_sdpa_kernel(%arg0: i32, %arg1: i32, %arg2: i32, %arg3: memref<1x1x8x32xf32, #tpu.memory_space<vmem>>, %arg4: memref<1x1x128x32xf32, #tpu.memory_space<vmem>>, %arg5: memref<1x1x128x32xf32, #tpu.memory_space<vmem>>, %arg6: memref<1x8x128xi8, #tpu.memory_space<vmem>>, %arg7: memref<1x1x8x128xf32, #tpu.memory_space<vmem>>, %arg8: memref<1x1x8x32xf32, #tpu.memory_space<vmem>>) attributes {dimension_semantics = [#tpu.dimension_semantics<parallel>, #tpu.dimension_semantics<parallel>, #tpu.dimension_semantics<arbitrary>], iteration_bounds = array<i64: 2, 2, 1>, scalar_prefetch = 0 : i64, scratch_operands = 0 : i64, tpu.core_type = #tpu.core_type<tc>, window_params = [{transform_indices = @transform_0, window_bounds = array<i64: 1, 1, 8, 32>}, {transform_indices = @transform_1, window_bounds = array<i64: 1, 1, 128, 32>}, {transform_indices = @transform_2, window_bounds = array<i64: 1, 1, 128, 32>}, {transform_indices = @transform_3, window_bounds = array<i64: 1, 8, 128>}, {transform_indices = @transform_4, window_bounds = array<i64: 1, 1, 8, 128>}, {transform_indices = @transform_5, window_bounds = array<i64: 1, 1, 8, 32>}]} {
    %c0 = arith.constant 0 : index
    %c0_0 = arith.constant 0 : index
    %c0_1 = arith.constant 0 : index
    %c0_2 = arith.constant 0 : index
    %0 = vector.load %arg3[%c0, %c0_0, %c0_1, %c0_2] : memref<1x1x8x32xf32, #tpu.memory_space<vmem>>, vector<1x1x8x32xf32>
    %1 = vector.shape_cast %0 : vector<1x1x8x32xf32> to vector<8x32xf32>
    %cst = arith.constant 0.176776692 : f32
    %2 = vector.broadcast %cst : f32 to vector<8x32xf32>
    %3 = arith.mulf %1, %2 : vector<8x32xf32>
    %c0_3 = arith.constant 0 : index
    %c0_4 = arith.constant 0 : index
    %c0_5 = arith.constant 0 : index
    %c0_6 = arith.constant 0 : index
    %4 = vector.load %arg4[%c0_3, %c0_4, %c0_5, %c0_6] : memref<1x1x128x32xf32, #tpu.memory_space<vmem>>, vector<1x1x128x32xf32>
    %5 = vector.shape_cast %4 : vector<1x1x128x32xf32> to vector<128x32xf32>
    %c0_7 = arith.constant 0 : index
    %c0_8 = arith.constant 0 : index
    %c0_9 = arith.constant 0 : index
    %c0_10 = arith.constant 0 : index
    %6 = vector.load %arg5[%c0_7, %c0_8, %c0_9, %c0_10] : memref<1x1x128x32xf32, #tpu.memory_space<vmem>>, vector<1x1x128x32xf32>
    %7 = vector.shape_cast %6 : vector<1x1x128x32xf32> to vector<128x32xf32>
    %c0_11 = arith.constant 0 : index
    %c0_12 = arith.constant 0 : index
    %c0_13 = arith.constant 0 : index
    %8 = vector.load %arg6[%c0_11, %c0_12, %c0_13] : memref<1x8x128xi8, #tpu.memory_space<vmem>>, vector<1x8x128xi8>
    %9 = vector.shape_cast %8 : vector<1x8x128xi8> to vector<8x128xi8>
    %cst_14 = arith.constant dense<0.000000e+00> : vector<8x128xf32>
    %10 = tpu.matmul %3, %5, %cst_14 {dimension_numbers = #tpu.dot_dimension_numbers<[1], [1], [0], [0], [0, 0, 1, 0], [], []>} : vector<8x32xf32>, vector<128x32xf32>, vector<8x128xf32> -> vector<8x128xf32>
    %c0_i8 = arith.constant 0 : i8
    %11 = vector.broadcast %c0_i8 : i8 to vector<8x128xi8>
    %12 = arith.cmpi ne, %9, %11 : vector<8x128xi8>
    %cst_15 = arith.constant -1.000000e+09 : f32
    %13 = vector.broadcast %cst_15 : f32 to vector<8x128xf32>
    %14 = arith.select %12, %13, %10 : vector<8x128xi1>, vector<8x128xf32>
    %15 = tpu.iota {dimensions = array<i32: 1>} : vector<8x128xi32>
    %c8_i32 = arith.constant 8 : i32
    %16 = vector.broadcast %c8_i32 : i32 to vector<8x128xi32>
    %17 = arith.cmpi sge, %15, %16 : vector<8x128xi32>
    %cst_16 = arith.constant 0xFF800000 : f32
    %18 = vector.broadcast %cst_16 : f32 to vector<8x128xf32>
    %19 = arith.select %17, %18, %14 : vector<8x128xi1>, vector<8x128xf32>
    %cst_17 = arith.constant dense<0xFF800000> : vector<8xf32>
    %20 = vector.multi_reduction <maximumf>, %19, %cst_17 [1] : vector<8x128xf32> to vector<8xf32>
    %21 = vector.shape_cast %20 : vector<8xf32> to vector<8x1xf32>
    %22 = vector.broadcast %21 : vector<8x1xf32> to vector<8x128xf32>
    %23 = arith.subf %19, %22 : vector<8x128xf32>
    %24 = math.exp %23 : vector<8x128xf32>
    %cst_18 = arith.constant dense<0.000000e+00> : vector<8xf32>
    %25 = vector.multi_reduction <add>, %24, %cst_18 [1] : vector<8x128xf32> to vector<8xf32>
    %26 = vector.shape_cast %25 : vector<8xf32> to vector<8x1xf32>
    %27 = tpu.reciprocal %26 : vector<8x1xf32> -> vector<8x1xf32>
    %28 = vector.broadcast %27 : vector<8x1xf32> to vector<8x128xf32>
    %29 = arith.mulf %24, %28 : vector<8x128xf32>
    %c0_19 = arith.constant 0 : index
    %c0_20 = arith.constant 0 : index
    %c0_21 = arith.constant 0 : index
    %c0_22 = arith.constant 0 : index
    %30 = vector.load %arg7[%c0_19, %c0_20, %c0_21, %c0_22] : memref<1x1x8x128xf32, #tpu.memory_space<vmem>>, vector<1x1x8x128xf32>
    %31 = vector.shape_cast %30 : vector<1x1x8x128xf32> to vector<8x128xf32>
    %32 = vector.shape_cast %29 : vector<8x128xf32> to vector<1x1x8x128xf32>
    tpu.vector_store %arg7[%c0_19, %c0_20, %c0_21, %c0_22], %32 {strides = array<i32>} : memref<1x1x8x128xf32, #tpu.memory_space<vmem>>, vector<1x1x8x128xf32>,
    %cst_23 = arith.constant dense<0.000000e+00> : vector<8x32xf32>
    %33 = tpu.matmul %29, %7, %cst_23 {dimension_numbers = #tpu.dot_dimension_numbers<[1], [0], [0], [1], [0, 0, 1, 1], [], []>} : vector<8x128xf32>, vector<128x32xf32>, vector<8x32xf32> -> vector<8x32xf32>
    %c0_24 = arith.constant 0 : index
    %c0_25 = arith.constant 0 : index
    %c0_26 = arith.constant 0 : index
    %c0_27 = arith.constant 0 : index
    %34 = vector.load %arg8[%c0_24, %c0_25, %c0_26, %c0_27] : memref<1x1x8x32xf32, #tpu.memory_space<vmem>>, vector<1x1x8x32xf32>
    %35 = vector.shape_cast %34 : vector<1x1x8x32xf32> to vector<8x32xf32>
    %36 = vector.shape_cast %33 : vector<8x32xf32> to vector<1x1x8x32xf32>
    tpu.vector_store %arg8[%c0_24, %c0_25, %c0_26, %c0_27], %36 {strides = array<i32>} : memref<1x1x8x32xf32, #tpu.memory_space<vmem>>, vector<1x1x8x32xf32>,
    return
  }
  func.func @transform_0(%arg0: i32, %arg1: i32, %arg2: i32) -> (i32, i32, i32, i32) {
    %c0_i32 = arith.constant 0 : i32
    %c0_i32_0 = arith.constant 0 : i32
    return %arg0, %arg1, %arg2, %c0_i32 : i32, i32, i32, i32
  }
  func.func @transform_1(%arg0: i32, %arg1: i32, %arg2: i32) -> (i32, i32, i32, i32) {
    %c0_i32 = arith.constant 0 : i32
    %c0_i32_0 = arith.constant 0 : i32
    %c0_i32_1 = arith.constant 0 : i32
    return %arg0, %arg1, %c0_i32, %c0_i32_0 : i32, i32, i32, i32
  }
  func.func @transform_2(%arg0: i32, %arg1: i32, %arg2: i32) -> (i32, i32, i32, i32) {
    %c0_i32 = arith.constant 0 : i32
    %c0_i32_0 = arith.constant 0 : i32
    %c0_i32_1 = arith.constant 0 : i32
    return %arg0, %arg1, %c0_i32, %c0_i32_0 : i32, i32, i32, i32
  }
  func.func @transform_3(%arg0: i32, %arg1: i32, %arg2: i32) -> (i32, i32, i32) {
    %c0_i32 = arith.constant 0 : i32
    %c0_i32_0 = arith.constant 0 : i32
    return %arg0, %arg2, %c0_i32 : i32, i32, i32
  }
  func.func @transform_4(%arg0: i32, %arg1: i32, %arg2: i32) -> (i32, i32, i32, i32) {
    %c0_i32 = arith.constant 0 : i32
    %c0_i32_0 = arith.constant 0 : i32
    return %arg0, %arg1, %arg2, %c0_i32 : i32, i32, i32, i32
  }
  func.func @transform_5(%arg0: i32, %arg1: i32, %arg2: i32) -> (i32, i32, i32, i32) {
    %c0_i32 = arith.constant 0 : i32
    %c0_i32_0 = arith.constant 0 : i32
    return %arg0, %arg1, %arg2, %c0_i32 : i32, i32, i32, i32
  }
}

</mosaic_0001>

<bundles_post_ra>
// kernel: tpu_custom_call.1
= control target key start
LH: loop header
LB: loop body
LE: loop exit
PB: predicated region body
PF: predicated region fallthrough
CT: control target
= control target key end

     0   :  { %11 = vsyncpa [#allocation3], 0  ;;  %s1570_s0 = inlined_call_operand.vmem [shape: f32[2,2,8,32], index: 0, kind: input, shape index: {}]   ;;  %s1571_s1 = inlined_call_operand.vmem [shape: f32[2,2,128,32], index: 1, kind: input, shape index: {}]   ;;  %s1572_s2 = inlined_call_operand.vmem [shape: f32[2,2,128,32], index: 2, kind: input, shape index: {}]   ;;  %s1573_s3 = inlined_call_operand.vmem [shape: s8[2,8,128], index: 3, kind: input, shape index: {}]   ;;  %s1574_s4 = inlined_call_operand.hbm [shape: f32[2,2,8,128], index: 4, kind: output, shape index: {0}]   ;;  %s1575_s5 = inlined_call_operand.hbm [shape: f32[2,2,8,32], index: 5, kind: output, shape index: {1}]  }
   0x1   :  { %13 = vsyncpa [#allocation3 + $0x1], 0 }
   0x2   :  { %14 = vsyncpa [#allocation5], 0 }
   0x3   :  { %16 = vsyncpa [#allocation5 + $0x1], 0  ;;  %s1292_s18 = smov 0   ;;  %s1294_s19 = smov 0  }
   0x4   :  { %s1296_s20 = smov 0   ;;  %s1298_s21 = smov 0  }
   0x5   :  { %s1300_s22 = smov 0   ;;  %s1302_s23 = smov 0  }
   0x6   :  { %s1304_s24 = smov 0   ;;  %s1306_s25 = smov 0  }
   0x7 LB: > { %s843_s26 = sadd.s32 4294967295, %s1254_s25   ;;  %s844_s27 = sadd.s32 4294967294, %s1254_s25   ;;  %s1254_s25 = sphi %s1306_s25, %s22_s25   ;;  %s1250_s24 = sphi %s1304_s24, %s1590_s24   ;;  %s1246_s23 = sphi %s1302_s23, %s1589_s23   ;;  %s1242_s22 = sphi %s1300_s22, %s1588_s22   ;;  %s1238_s21 = sphi %s1298_s21, %s1587_s21   ;;  %s1234_s20 = sphi %s1296_s20, %s1586_s20   ;;  %s1230_s19 = sphi %s1294_s19, %s1585_s19   ;;  %s1226_s18 = sphi %s1292_s18, %s1584_s18  }
   0x8   : > { %s37_s28 = sadd.s32 1, %s1246_s23  ;;  %s41_s29 = sadd.s32 1, %s1250_s24 }
   0x9   : > { %p39_p0 = scmp.ge.s32.totalorder %s37_s28, 2  ;;  %p176_p1 = scmp.ne.s32.totalorder %s1234_s20, %s1230_s19 }
   0xa   : > { %p177_p2 = scmp.eq.s32.totalorder %s843_s26, 3  ;;  %p182_p5 = scmp.ne.s32.totalorder %s1230_s19, %s1226_s18 }
   0xb   : > { %s1592_s28 = smov (%p39_p0, %s37_s28), 0  ;;  %s1594_s29 = smov (!%p39_p0, %s41_s29), %s1250_s24 }
   0xc   : > { %s160_s30 = ssub.s32 %s1246_s23, %s1592_s28  ;;  %p1343_p3 = por %p177_p2, %p176_p1 }
   0xd   : > { %p43_p4 = scmp.ge.s32.totalorder %s1594_s29, 2  ;;  %p183_p6 = scmp.eq.s32.totalorder %s844_s27, 3 }
   0xe   : > { %p847_p7 = scmp.ge.s32.totalorder %s1254_s25, 1  ;;  %p279_p9 = scmp.lt.s32.totalorder %s1254_s25, 5 }
   0xf   : > { %s1596_s29 = smov (%p43_p4, %s1594_s29), 0  ;;  %p1352_p8 = por %p183_p6, %p182_p5 }
  0x10   : > { %s159_s8 = ssub.s32 %s1250_s24, %s1596_s29  ;;  %s166_s9 = sadd.s32 1, %s1234_s20 }
  0x11   : > { %s161_s10 = sor.u32 %s160_s30, %s159_s8  ;;  %p280_p10 = pnand %p847_p7, %p279_p9 }
  0x12   : > { %p164_p11 = scmp.eq.s32.totalorder %s161_s10, 0  ;;  %p343_p12 = scmp.lt.s32.totalorder (!%p280_p10), %s1242_s22, 1  ;;  %v1256_v0 = vmov (!%p280_p10), 0.0|0.0   ;;  %vm1257_vm0 = vmmov (!%p280_p10), 0   ;;  %v1258_v1 = vmov (!%p280_p10), 0.0   ;;  %vm416_vm1 = vcmask (!%p280_p10), 261120  }
  0x13   : > { %283 = sbr.rel (%p280_p10) target bundleno = 851 (0x353), region = 36  ;;  %p345_p13 = scmp.lt.s32.totalorder (!%p280_p10), %s1238_s21, 1  ;;  %988 = vmatprep.subr.bf16.mxu0 (!%p280_p10), %v1256_v0  ;;  %950 = vmatprep.mubr.msk.f32.mxu0 (!%p280_p10), %vm1257_vm0, %v1258_v1  ;;  %vm1391_vm2 = vmpackc.low (!%p280_p10), %vm416_vm1, %vm416_vm1  ;;  %v1259_v30 = vmov (!%p280_p10), 0   ;;  %v543_v32 = vlaneseq (!%p280_p10) }
  0x14   : > { %s1361_s11 = scalar_select %p164_p11, %s1234_s20, %s166_s9  }
  0x15   : > { %1020 = vmatprep.subr.bf16.mxu1 (!%p280_p10), %v1256_v0  ;;  %985 = vmatprep.mubr.msk.f32.mxu1 (!%p280_p10), %vm1257_vm0, %v1258_v1  ;;  %v544_v34 = vand.u32 (!%p280_p10), 127, %v543_v32 }
  0x17   : > { %vm545_vm5 = vcmp.ge.s32.totalorder (!%p280_p10), %v544_v34, 8 }
  0x1a   : > { %s1367_s12 = scalar_select %p343_p12, %s1242_s22, 1 }
  0x1b   : > { %s346_s13 = scalar_select %p345_p13, %s1238_s21, 1 }
  0x1c   : > { %s853_s14 = sshll.u32 %s1367_s12, 5  ;;  %s850_s15 = sshll.u32 %s1367_s12, 1 }
  0x1d   : > { %s852_s16 = sshll.u32 %s346_s13, 4  ;;  %s1375_s17 = sadd.s32 %s850_s15, %s346_s13 }
  0x1e   : > { %s1377_s26 = sadd.s32 %s853_s14, %s852_s16  ;;  %s851_s10 = sshll.u32 %s1375_s17, 3 }
  0x1f   : > { %s1576_s27 = sshll.u32 %s1377_s26, 3  ;;  %s353_s16 = scalar_lea.vmem %s1570_s0, %s851_s10 }
  0x20   : > { %s1385_s9 = scalar_lea.vmem %s1571_s1, %s1576_s27  ;;  %v381_v27 = vld [vmem:[%s353_s16] sm:$0xff]  ;;  %s378_s27 = scalar_lea.vmem %s1573_s3, %s850_s15 }
  0x21   : > { %v383_v2 = vld [vmem:[%s1385_s9] sm:$0xff]  ;;  %v384_v3 = vld [vmem:[%s1385_s9 + $0x8] sm:$0xff]  ;;  %v385_v6 = vld [vmem:[%s1385_s9 + $0x10] sm:$0xff]  ;;  %v382_v28 = vmul.f32 0.17677669, %v381_v27  ;;  %s1582_s12 = sshll.u32 %s1377_s26, 3 }
  0x22   : > { %v989_v5 = vpack.c.bf16 %v384_v3, %v383_v2  ;;  %v386_v7 = vld [vmem:[%s1385_s9 + $0x18] sm:$0xff]  ;;  %v387_v9 = vld [vmem:[%s1385_s9 + $0x20] sm:$0xff]  ;;  %v388_v10 = vld [vmem:[%s1385_s9 + $0x28] sm:$0xff]  ;;  %s1447_s10 = scalar_lea.vmem %s1572_s2, %s1582_s12  ;;  %s1473_s15 = sand.u32 1, %s1230_s19  }
  0x23   : > { %v993_v8 = vpack.c.bf16 %v386_v7, %v385_v6  ;;  %v997_v11 = vpack.c.bf16 %v388_v10, %v387_v9  ;;  %v389_v12 = vld [vmem:[%s1385_s9 + $0x30] sm:$0xff]  ;;  %v390_v13 = vld [vmem:[%s1385_s9 + $0x38] sm:$0xff]  ;;  %v391_v15 = vld [vmem:[%s1385_s9 + $0x40] sm:$0xff]  ;;  %s848_s26 = sshll.u32 %s1473_s15, 3  ;;  %s878_s13 = sshll.u32 %s1242_s22, 1 }
  0x24   : > { %991 = vmatpush3.bf16.xpose.msk.msra.mxu0 %vm1391_vm2, %v989_v5  ;;  %v1001_v14 = vpack.c.bf16 %v390_v13, %v389_v12  ;;  %v392_v16 = vld [vmem:[%s1385_s9 + $0x48] sm:$0xff]  ;;  %v393_v18 = vld [vmem:[%s1385_s9 + $0x50] sm:$0xff]  ;;  %v394_v19 = vld [vmem:[%s1385_s9 + $0x58] sm:$0xff]  ;;  %s1480_s14 = sadd.s32 %s1238_s21, %s878_s13  ;;  %s1260_s22 = smov [#allocation2]  }
  0x25   : > { %992 = vmatprep.subr.bf16.mxu0 %v1256_v0  ;;  %v1005_v17 = vpack.c.bf16 %v392_v16, %v391_v15  ;;  %v1009_v20 = vpack.c.bf16 %v394_v19, %v393_v18  ;;  %v395_v21 = vld [vmem:[%s1385_s9 + $0x60] sm:$0xff]  ;;  %v396_v22 = vld [vmem:[%s1385_s9 + $0x68] sm:$0xff]  ;;  %v397_v24 = vld [vmem:[%s1385_s9 + $0x70] sm:$0xff]  ;;  %s1577_s16 = sshll.u32 %s1480_s14, 7  ;;  %s1132_s21 = sshll.u32 %s1260_s22, 4  ;;  %s1133_s21 = int_to_ptr.vmem [resolvable:$false] %s1132_s21 }
  0x26   : > { %v1013_v23 = vpack.c.bf16 %v396_v22, %v395_v21  ;;  %v398_v25 = vld [vmem:[%s1385_s9 + $0x78] sm:$0xff]  ;;  %v415_v29 = vld [vmem:[%s378_s27] sm:$0x3]  ;;  %v400_v40 = vld [vmem:[%s1447_s10 + $0x8] sm:$0xff]  ;;  %s335_s27 = scalar_lea.vmem [#allocation2], %s848_s26  ;;  %s1488_s17 = scalar_lea.hbm %s1574_s4, %s1577_s16 }
  0x27   : > { %v1017_v26 = vpack.c.bf16 %v398_v25, %v397_v24  ;;  %vm538_vm3 = vnez %v415_v29  ;;  %v399_v39 = vld [vmem:[%s1447_s10] sm:$0xff]  ;;  %v401_v41 = vld [vmem:[%s1447_s10 + $0x10] sm:$0xff]  ;;  %v402_v43 = vld [vmem:[%s1447_s10 + $0x18] sm:$0xff]  ;;  %s650_s30 = sshll.u32 %s335_s27, 4  ;;  %s629_s9 = scalar_lea.sflag [#allocation3], %s1473_s15  ;;  %s651_s30 = int_to_ptr.vmem [resolvable:$true] %s650_s30 }
  0x28   : > { %v539_v31 = vsel %vm538_vm3, 16843009, %v1259_v30  ;;  %v1021_v42 = vpack.c.bf16 %v400_v40, %v399_v39  ;;  %v1024_v44 = vpack.c.bf16 %v402_v43, %v401_v41  ;;  %v403_v45 = vld [vmem:[%s1447_s10 + $0x20] sm:$0xff]  ;;  %v404_v46 = vld [vmem:[%s1447_s10 + $0x28] sm:$0xff]  ;;  %v405_v48 = vld [vmem:[%s1447_s10 + $0x30] sm:$0xff]  ;;  %s1134_s13 = scalar_lea.vmem %s1133_s21, 256  ;;  %p1135_p4 = scmp.lt.s32.totalorder %s651_s30, %s1133_s21 }
  0x29   : > { %v540_v33 = vunpack.c.0.s8 %v539_v31  ;;  %v1027_v47 = vpack.c.bf16 %v404_v46, %v403_v45  ;;  %v406_v49 = vld [vmem:[%s1447_s10 + $0x38] sm:$0xff]  ;;  %v407_v51 = vld [vmem:[%s1447_s10 + $0x40] sm:$0xff]  ;;  %v408_v52 = vld [vmem:[%s1447_s10 + $0x48] sm:$0xff] }
  0x2a   : > { %1022 = vmatpush3.bf16.msra.mxu1 %v1021_v42  ;;  %v1030_v50 = vpack.c.bf16 %v406_v49, %v405_v48  ;;  %v1033_v53 = vpack.c.bf16 %v408_v52, %v407_v51  ;;  %v409_v58 = vld [vmem:[%s1447_s10 + $0x50] sm:$0xff]  ;;  %v410_v59 = vld [vmem:[%s1447_s10 + $0x58] sm:$0xff]  ;;  %v411_v61 = vld [vmem:[%s1447_s10 + $0x60] sm:$0xff] }
  0x2b   : > { %vm541_vm4 = vcmp.ne.s32.totalorder %v540_v33, 0  ;;  %1023 = vmatprep.subr.bf16.mxu1 %v1256_v0  ;;  %v1036_v60 = vpack.c.bf16 %v410_v59, %v409_v58  ;;  %v412_v62 = vld [vmem:[%s1447_s10 + $0x68] sm:$0xff]  ;;  %v413_v1 = vld [vmem:[%s1447_s10 + $0x70] sm:$0xff]  ;;  %v414_v2 = vld [vmem:[%s1447_s10 + $0x78] sm:$0xff]  ;;  %s1128_s10 = scalar_lea.vmem %s651_s30, 128 }
  0x2c   : > { %995 = vmatpush3.bf16.xpose.msk.msra.mxu0 %vm1391_vm2, %v993_v8  ;;  %v1039_v63 = vpack.c.bf16 %v412_v62, %v411_v61  ;;  %v1042_v3 = vpack.c.bf16 %v414_v2, %v413_v1  ;;  %p1129_p0 = scmp.ne.s32.totalorder %s651_s30, %s1128_s10  ;;  %p1136_p5 = scmp.lt.s32.totalorder %s1134_s13, %s1128_s10 }
  0x2d   : > { %996 = vmatprep.subr.bf16.mxu0 %v1256_v0 }
  0x2e   : > { %1025 = vmatpush3.bf16.msra.mxu1 %v1024_v44  ;;  %p1130_p1 = pnand %p1129_p0, %p1343_p3  ;;  %p1137_p6 = por %p1136_p5, %p1135_p4 }
  0x2f   : > { %1026 = vmatprep.subr.bf16.mxu1 %v1256_v0 }
  0x30   : > { %p1131_p2 = pneg %p1130_p1 }
  0x32   : > { %1028 = vmatpush3.bf16.msra.mxu1 %v1027_v47  ;;  %p1138_p7 = pnand %p1137_p6, %p1131_p2 }
  0x33   : > { %1029 = vmatprep.subr.bf16.mxu1 %v1256_v0 }
  0x34   : > { %999 = vmatpush3.bf16.xpose.msk.msra.mxu0 %vm1391_vm2, %v997_v11 }
  0x35   : > { %1000 = vmatprep.subr.bf16.mxu0 %v1256_v0 }
  0x36   : > { %1031 = vmatpush3.bf16.msra.mxu1 %v1030_v50 }
  0x37   : > { %1032 = vmatprep.subr.bf16.mxu1 %v1256_v0 }
  0x3a   : > { %1034 = vmatpush3.bf16.msra.mxu1 %v1033_v53 }
  0x3b   : > { %1035 = vmatprep.subr.bf16.mxu1 %v1256_v0 }
  0x3c   : > { %1003 = vmatpush3.bf16.xpose.msk.msra.mxu0 %vm1391_vm2, %v1001_v14 }
  0x3d   : > { %1004 = vmatprep.subr.bf16.mxu0 %v1256_v0 }
  0x3e   : > { %1037 = vmatpush3.bf16.msra.mxu1 %v1036_v60 }
  0x3f   : > { %1038 = vmatprep.subr.bf16.mxu1 %v1256_v0 }
  0x42   : > { %1040 = vmatpush3.bf16.msra.mxu1 %v1039_v63 }
  0x43   : > { %1041 = vmatprep.subr.bf16.mxu1 %v1256_v0 }
  0x44   : > { %1007 = vmatpush3.bf16.xpose.msk.msra.mxu0 %vm1391_vm2, %v1005_v17 }
  0x45   : > { %1008 = vmatprep.subr.bf16.mxu0 %v1256_v0 }
  0x46   : > { %1043 = vmatpush3.bf16.msra.mxu1 %v1042_v3 }
  0x4c   : > { %1011 = vmatpush3.bf16.xpose.msk.msra.mxu0 %vm1391_vm2, %v1009_v20 }
  0x4d   : > { %1012 = vmatprep.subr.bf16.mxu0 %v1256_v0 }
  0x54   : > { %1015 = vmatpush3.bf16.xpose.msk.msra.mxu0 %vm1391_vm2, %v1013_v23 }
  0x55   : > { %1016 = vmatprep.subr.bf16.mxu0 %v1256_v0 }
  0x5c   : > { %1019 = vmatpush3.bf16.xpose.msk.msra.mxu0 %vm1391_vm2, %v1017_v26 }
  0x63   : > { %951 = vmatmul.mubr.msk.f32.vlgmr.msra.gmra.mrb[0].mxu0 %vm416_vm1, %v382_v28 }
 0x136   : > { %v534_v35 = vpop.f32.mrb[0].mxu0 }
 0x137   : > { %v542_v36 = vsel %vm541_vm4, -1e+09, %v534_v35  ;;  %v952_v37 = vpop.f32.mrb[1].mxu0 }
 0x138   : > { %v546_v38 = vsel %vm545_vm5, -inf, %v542_v36 }
 0x139   : > { %547 = vmax.xlane.f32.xlu0 %v546_v38 }
 0x1c6   : > { %v548_v54 = vpop.xlane.xlu0 %547 }
 0x1c7   : > { %v549_v55 = vsub.f32 %v546_v38, %v548_v54 }
 0x1c9   : > { %v550_v56 = vmul.f32 1.442695, %v549_v55 }
 0x1cb   : > { %1124 = vpow2.f32 %v550_v56 }
 0x1d5   : > { %v1125_v57 = vpop.eup %1124 }
 0x1d6   : > { %552 = vadd.xlane.f32.xlu0 %v1125_v57 }
 0x263   : > { %v553_v4 = vpop.xlane.xlu0 %552 }
 0x264   : > { %1126 = vrcp.f32 %v553_v4 }
 0x26e   : > { %v1127_v5 = vpop.eup %1126 }
 0x26f   : > { %v555_v6 = vmul.f32 %v1127_v5, %v1125_v57 }
 0x271   : > { %986 = vmatmul.mubr.f32.vlgmr.msra.gmra.mrb[0].mxu1 %v555_v6  ;;  %556 = vst [vmem:[%s335_s27] sm:$0xff] %v555_v6 }
 0x272   : > { %1141 = shalt.err (!%p1138_p7)
}
 0x273   : > { %s1142_s27 = scalar_lea.hbm %s1488_s17, 128  ;;  %s1146_s22 = scalar_lea.hbm %s1574_s4, 512 }
 0x274   : > { %p1143_p9 = scmp.ne.s32.totalorder %s1488_s17, %s1142_s27  ;;  %p1147_p12 = scmp.lt.u32.totalorder %s1488_s17, %s1574_s4 }
 0x275   : > { %p1148_p13 = scmp.lt.u32.totalorder %s1146_s22, %s1142_s27  ;;  %p1150_p1 = scmp.lt.u32.totalorder %s1142_s27, %s1488_s17 }
 0x276   : > { %p1144_p10 = pnand %p1143_p9, %p1343_p3 }
 0x277   : > { %p1149_p0 = por %p1148_p13, %p1147_p12 }
 0x278   : > { %p1145_p11 = pneg %p1144_p10 }
 0x279   : > { %p1151_p2 = por %p1150_p1, %p1149_p0 }
 0x27b   : > { %p1152_p4 = pnand %p1151_p2, %p1145_p11 }
 0x27d   : > { %1155 = shalt.err (!%p1152_p4)
}
 0x27e   : > { %1044 = dma.vmem_to_hbm [thread:$0]  (%p1343_p3), %s651_s30, 128, %s1488_s17, %s629_s9  }
 0x27f   : > { %s342_s10 = scalar_lea.vmem [#allocation4], %s848_s26  ;;  %s1583_s8 = sshll.u32 %s1480_s14, 7 }
 0x280   : > { %s666_s13 = sshll.u32 %s342_s10, 4  ;;  %s1515_s22 = scalar_lea.hbm %s1575_s5, %s1583_s8  ;;  %s1517_s13 = int_to_ptr.vmem [resolvable:$true] %s666_s13 }
 0x281   : > { %s634_s27 = scalar_lea.sflag [#allocation5], %s1473_s15  ;;  %s1156_s30 = scalar_lea.vmem %s1517_s13, 128 }
 0x282   : > { %p1157_p5 = scmp.ne.s32.totalorder %s1517_s13, %s1156_s30  ;;  %s1261_s26 = smov [#allocation4]  }
 0x283   : > { %s1160_s14 = sshll.u32 %s1261_s26, 4  ;;  %s1161_s14 = int_to_ptr.vmem [resolvable:$false] %s1160_s14 }
 0x284   : > { %p1158_p6 = pnand %p1157_p5, %p1343_p3  ;;  %s1162_s17 = scalar_lea.vmem %s1161_s14, 256 }
 0x285   : > { %p1163_p9 = scmp.lt.s32.totalorder %s1517_s13, %s1161_s14  ;;  %p1164_p10 = scmp.lt.s32.totalorder %s1162_s17, %s1156_s30 }
 0x286   : > { %p1159_p7 = pneg %p1158_p6 }
 0x287   : > { %p1165_p11 = por %p1164_p10, %p1163_p9 }
 0x289   : > { %p1166_p12 = pnand %p1165_p11, %p1159_p7 }
 0x344   : > { %v623_v0 = vpop.f32.mrb[0].mxu1 }
 0x345   : > { %627 = vst.msk [vmem:[%s342_s10] sm:$0xff] %vm416_vm1, %v623_v0  ;;  %v987_v7 = vpop.f32.mrb[1].mxu1 }
 0x346   : > { %1169 = shalt.err (!%p1166_p12)
}
 0x347   : > { %s1170_s15 = scalar_lea.hbm %s1515_s22, 128  ;;  %s1174_s10 = scalar_lea.hbm %s1575_s5, 512 }
 0x348   : > { %p1171_p13 = scmp.ne.s32.totalorder %s1515_s22, %s1170_s15  ;;  %p1175_p2 = scmp.lt.u32.totalorder %s1515_s22, %s1575_s5 }
 0x349   : > { %p1176_p4 = scmp.lt.u32.totalorder %s1174_s10, %s1170_s15  ;;  %p1178_p6 = scmp.lt.u32.totalorder %s1170_s15, %s1515_s22 }
 0x34a   : > { %p1172_p0 = pnand %p1171_p13, %p1343_p3 }
 0x34b   : > { %p1177_p5 = por %p1176_p4, %p1175_p2 }
 0x34c   : > { %p1173_p1 = pneg %p1172_p0 }
 0x34d   : > { %p1179_p7 = por %p1178_p6, %p1177_p5 }
 0x34f   : > { %p1180_p9 = pnand %p1179_p7, %p1173_p1 }
 0x351   : > { %1183 = shalt.err (!%p1180_p9)
}
 0x352   : > { %1045 = dma.vmem_to_hbm [thread:$0]  (%p1343_p3), %s1517_s13, 128, %s1515_s22, %s634_s27  }
 0x353 PF: > { %p1055_p10 = scmp.ge.s32.totalorder %s1254_s25, 2  ;;  %s678_s12 = sand.u32 1, %s1226_s18  }
 0x354   : > { %s679_s30 = scalar_lea.sflag [#allocation3], %s678_s12 }
 0x355   : > { %p1049_p11 = pnand %p1055_p10, %p1352_p8 }
 0x357   : > { %1217 = dma.done.wait (!%p1049_p11), %s679_s30, 128  }
 0x358   : > { %1219 = vsyncadd (!%p1049_p11), %s679_s30, 4294967168  ;;  %s688_s26 = scalar_lea.sflag [#allocation5], %s678_s12 }
 0x359   : > { %1221 = dma.done.wait (!%p1049_p11), %s688_s26, 128  }
 0x35a   : > { %1223 = vsyncadd (!%p1049_p11), %s688_s26, 4294967168  ;;  %s22_s25 = sadd.s32 1, %s1254_s25   ;;  %s1584_s18 = smov %s1230_s19 }
 0x35b   : > { %p19_p12 = scmp.ge.s32.totalorder %s22_s25, 6   ;;  %s1585_s19 = smov %s1234_s20 }
 0x35c   : > { %s1586_s20 = smov %s1361_s11  ;;  %s1587_s21 = smov %s1246_s23 }
 0x35d   : > { %s1588_s22 = smov %s1250_s24  ;;  %s1589_s23 = smov %s1592_s28 }
 0x35e   : > { %s1590_s24 = smov %s1596_s29  ;;  %21 = sbr.rel (!%p19_p12) target bundleno = 7 (0x7), region = 97 }
 0x365   :  { %693 = vsyncpa [#allocation3], 1 }
 0x366   :  { %695 = vsyncpa [#allocation3 + $0x1], 1 }
 0x367   :  { %696 = vsyncpa [#allocation5], 1 }
 0x368   :  { %698 = vsyncpa [#allocation5 + $0x1], 1 }

</bundles_post_ra>
